<compile_context>
chip_gen: v6e
topology: v6e:2x2x1
jax: 0.10.0
libtpu: 0.0.40
codegen_flags: <defaults>
</compile_context>

<pallas_src>
import jax
import jax.numpy as jnp
from jax.experimental import pallas as pl
from jax.experimental.pallas import tpu as pltpu


# ---------------------------------------------------------------------------
# Per-generation tuning: preferred tile sizes + scoped-VMEM budget.
# ---------------------------------------------------------------------------
def _device_tuning():
    try:
        kind = jax.devices()[0].device_kind.lower()
    except Exception:
        kind = ""
    if "v5 lite" in kind or "v5lite" in kind or "v5e" in kind:
        # v5e: 4x128^2 MXU, 128 MiB physical VMEM, lowest HBM BW -> big tiles.
        cfg = dict(tm=512, tn=512, tk=1024, vmem=100 * 1024 * 1024)
    elif "v6" in kind:
        # v6e: 2x256^2 MXU, 128 MiB physical VMEM -> fattest tiles.
        cfg = dict(tm=512, tn=1024, tk=1024, vmem=100 * 1024 * 1024)
    else:
        # v7x (or unknown): only 64 MiB physical VMEM -> leaner tiles/budget.
        cfg = dict(tm=512, tn=512, tk=1024, vmem=48 * 1024 * 1024)
    # If the runtime exposes the real VMEM capacity, never request more than
    # ~3/4 of it (leaves headroom for compiler scratch).
    try:
        cap = pltpu.get_tpu_info().vmem_capacity_bytes
        cfg["vmem"] = min(cfg["vmem"], int(cap) * 3 // 4)
    except Exception:
        pass
    return cfg


def _round_up(n, mult):
    return ((n + mult - 1) // mult) * mult


def _fit_tile(dim, pref, grain):
    """Largest tile <= pref that divides `dim` and is a multiple of `grain`.
    `dim` is always a multiple of `grain` here (arrays are pre-padded), so the
    search always terminates at a legal, unmasked tile (worst case `grain`)."""
    t = min(pref, dim)
    t -= t % grain
    t = max(t, grain)
    while t > grain and dim % t:
        t -= grain
    return t if dim % t == 0 else dim


# ---------------------------------------------------------------------------
# Pallas kernels: one (i, j, k) grid step of y = x @ W + b.
# K is the innermost ("arbitrary") reduction axis.
# ---------------------------------------------------------------------------
def _linear_kernel_f32out(x_ref, w_ref, b_ref, o_ref):
    # f32 output: o_ref is resident across the K axis (its block index ignores
    # k), so accumulate into it directly — no VMEM acc scratch needed.
    k = pl.program_id(2)

    @pl.when(k == 0)
    def _():
        # Fold the bias into the init (replaces a separate epilogue add).
        o_ref[...] = jnp.broadcast_to(
            b_ref[...].astype(jnp.float32), o_ref.shape
        ).astype(o_ref.dtype)

    # In-kernel bf16 cast of the x tile (hides under MXU); f32 accumulation.
    o_ref[...] += jnp.dot(
        x_ref[...].astype(jnp.bfloat16),
        w_ref[...].astype(jnp.bfloat16),
        preferred_element_type=jnp.float32,
    )


def _linear_kernel_acc(x_ref, w_ref, b_ref, o_ref, acc_ref):
    # Non-f32 output: keep an f32 VMEM accumulator, cast once in the epilogue.
    k = pl.program_id(2)

    @pl.when(k == 0)
    def _():
        acc_ref[...] = jnp.broadcast_to(
            b_ref[...].astype(jnp.float32), acc_ref.shape
        )

    acc_ref[...] += jnp.dot(
        x_ref[...].astype(jnp.bfloat16),
        w_ref[...].astype(jnp.bfloat16),
        preferred_element_type=jnp.float32,
    )

    @pl.when(k == pl.num_programs(2) - 1)
    def _():
        o_ref[...] = acc_ref[...].astype(o_ref.dtype)


def pallas_linear(x, w, b, *, tm=None, tn=None, tk=None, out_dtype=jnp.float32):
    """x: [M, K], w: [K, N], b: [1, N] -> [M, N]; f32 accumulation inside."""
    M, K = x.shape
    K2, N = w.shape
    assert K == K2 and b.shape == (1, N)

    tune = _device_tuning()
    tm_pref = tm or tune["tm"]
    tn_pref = tn or tune["tn"]
    tk_pref = tk or tune["tk"]

    # Pad awkward shapes up to hardware grains (16 sublanes for bf16 packing,
    # 128 lanes) so every tile is unmasked and lane-dense; slice the pad off
    # afterwards.  K-padding with zeros does not change the result.
    Mp, Kp, Np = _round_up(M, 16), _round_up(K, 128), _round_up(N, 128)
    if (Mp, Kp) != (M, K):
        x = jnp.pad(x, ((0, Mp - M), (0, Kp - K)))
    if (Kp, Np) != (K, N):
        w = jnp.pad(w, ((0, Kp - K), (0, Np - N)))
        b = jnp.pad(b, ((0, 0), (0, Np - N)))

    tm = _fit_tile(Mp, tm_pref, 16)     # sublane grain (bf16 packing)
    tn = _fit_tile(Np, tn_pref, 128)    # lane grain
    tk = _fit_tile(Kp, tk_pref, 128)    # lane grain

    # v7x megacore guard: keep at least one "parallel" axis with >= 2 blocks
    # so the two TensorCores both get work.
    if Mp // tm == 1 and Np // tn == 1:
        if Np >= 256:
            tn = _fit_tile(Np, max(128, tn // 2), 128)
        elif Mp >= 32:
            tm = _fit_tile(Mp, max(16, tm // 2), 16)

    assert Mp % tm == 0 and Np % tn == 0 and Kp % tk == 0
    grid = (Mp // tm, Np // tn, Kp // tk)

    if jnp.dtype(out_dtype) == jnp.dtype(jnp.float32):
        kernel = _linear_kernel_f32out
        scratch = []                       # accumulate directly into o_ref
    else:
        kernel = _linear_kernel_acc
        scratch = [pltpu.VMEM((tm, tn), jnp.float32)]

    out = pl.pallas_call(
        kernel,
        out_shape=jax.ShapeDtypeStruct((Mp, Np), out_dtype),
        grid_spec=pltpu.PrefetchScalarGridSpec(
            num_scalar_prefetch=0,
            grid=grid,
            in_specs=[
                pl.BlockSpec((tm, tk), lambda i, j, k: (i, k)),
                pl.BlockSpec((tk, tn), lambda i, j, k: (k, j)),
                # Bias: one (1, tn) lane slab per output-column tile, consumed
                # only in the k == 0 init.
                pl.BlockSpec((1, tn), lambda i, j, k: (0, j)),
            ],
            out_specs=pl.BlockSpec((tm, tn), lambda i, j, k: (i, j)),
            scratch_shapes=scratch,
        ),
        compiler_params=pltpu.CompilerParams(
            dimension_semantics=("parallel", "parallel", "arbitrary"),
            vmem_limit_bytes=tune["vmem"],
        ),
    )(x, w, b)

    if (Mp, Np) != (M, N):
        out = out[:M, :N]
    return out


# ---------------------------------------------------------------------------
# NullDDP: exact semantic port of the PyTorch wrapper.
#   forward(*args, **kwargs) -> self.module(*args, **kwargs)
# ---------------------------------------------------------------------------
class NullDDP:
    def __init__(self, module, *args, **kwargs):
        self.module = module
        self.require_backward_grad_sync = False

    def __call__(self, *args, **kwargs):
        # Identity delegation — no extra compute, exactly like the original.
        # TODO(synk): require_backward_grad_sync is a training-time DDP flag
        # with no forward-pass (hence no Pallas) equivalent; kept as attribute.
        return self.module(*args, **kwargs)


class PallasLinearModule:
    """Deterministic inner module (stand-in for the DDP'd model): y = x @ W + b.

    Weights are bf16 (halves the W DMA stream, MXU-native); activations stay
    in their native dtype and are cast to bf16 *inside* the kernel, so there
    is no extra wrapper-side HBM pass over x.  Bias / accumulation are f32.
    """

    def __init__(self, d_in, d_out, *, tm=None, tn=None, tk=None,
                 out_dtype=jnp.float32):
        kw, kb = jax.random.split(jax.random.PRNGKey(42))
        scale = 1.0 / jnp.sqrt(jnp.float32(d_in))
        self.w = (jax.random.normal(kw, (d_in, d_out), jnp.float32) * scale
                  ).astype(jnp.bfloat16)
        self.b = jax.random.normal(kb, (1, d_out), jnp.float32) * 0.01
        self._tiles = dict(tm=tm, tn=tn, tk=tk)
        self._out_dtype = out_dtype

    def __call__(self, x):
        return pallas_linear(x, self.w, self.b,
                             out_dtype=self._out_dtype, **self._tiles)


if __name__ == "__main__":
    # Small but MXU-friendly shapes with explicit 128-tiles so the demo
    # exercises a (2, 2, 4) grid: multi-step K accumulation, the pl.when
    # bias-init, and direct-into-o_ref accumulation.  Production shapes should
    # omit the tile overrides and take the device-tuned (512-ish) defaults.
    batch, d_in, d_out = 256, 512, 256
    x = jax.random.normal(jax.random.PRNGKey(0), (batch, d_in), jnp.float32)

    inner = PallasLinearModule(d_in, d_out, tm=128, tn=128, tk=128)
    model = NullDDP(inner)  # the module under test: pure pass-through wrapper

    y = jax.block_until_ready(model(x))

    # Sanity 1: NullDDP(module)(x) must equal module(x) exactly (same path).
    y_direct = jax.block_until_ready(inner(x))
    # Sanity 2: plain-JAX reference with the same numerics (bf16 operands,
    # f32 accumulation, bias add).
    y_ref = (
        jnp.dot(x.astype(jnp.bfloat16).astype(jnp.float32),
                inner.w.astype(jnp.float32),
                preferred_element_type=jnp.float32)
        + inner.b
    )
    assert y.shape == (batch, d_out)
    assert y.dtype == jnp.float32
    assert jnp.allclose(y, y_direct)
    assert jnp.allclose(y, y_ref, atol=1e-2, rtol=1e-2)

    # Sanity 3: bf16-output path (f32 accumulation via VMEM scratch).
    y_bf16 = jax.block_until_ready(
        pallas_linear(x, inner.w, inner.b, tm=128, tn=128, tk=128,
                      out_dtype=jnp.bfloat16))
    assert y_bf16.dtype == jnp.bfloat16
    assert jnp.allclose(y_bf16.astype(jnp.float32), y, atol=5e-2, rtol=5e-2)

    print("KERNEL_OK")
</pallas_src>

<mosaic_0001>
module attributes {stable_mosaic.version = 11 : i64} {
  func.func @_linear_kernel_f32out(%arg0: i32, %arg1: i32, %arg2: i32, %arg3: memref<128x128xf32, #tpu.memory_space<vmem>>, %arg4: memref<128x128xbf16, #tpu.memory_space<vmem>>, %arg5: memref<1x128xf32, #tpu.memory_space<vmem>>, %arg6: memref<128x128xf32, #tpu.memory_space<vmem>>) attributes {dimension_semantics = [#tpu.dimension_semantics<parallel>, #tpu.dimension_semantics<parallel>, #tpu.dimension_semantics<arbitrary>], iteration_bounds = array<i64: 2, 2, 4>, scalar_prefetch = 0 : i64, scratch_operands = 0 : i64, tpu.core_type = #tpu.core_type<tc>, window_params = [{transform_indices = @transform_0, window_bounds = array<i64: 128, 128>}, {transform_indices = @transform_1, window_bounds = array<i64: 128, 128>}, {transform_indices = @transform_2, window_bounds = array<i64: 1, 128>}, {transform_indices = @transform_3, window_bounds = array<i64: 128, 128>}]} {
    %c0_i32 = arith.constant 0 : i32
    %0 = arith.cmpi eq, %arg2, %c0_i32 : i32
    %1 = arith.extui %0 : i1 to i32
    %c0_i32_0 = arith.constant 0 : i32
    %2 = arith.cmpi ne, %1, %c0_i32_0 : i32
    scf.if %2 {
      %c0_8 = arith.constant 0 : index
      %c0_9 = arith.constant 0 : index
      %10 = vector.load %arg5[%c0_8, %c0_9] : memref<1x128xf32, #tpu.memory_space<vmem>>, vector<1x128xf32>
      %11 = vector.shape_cast %10 : vector<1x128xf32> to vector<1x128xf32>
      %12 = vector.broadcast %11 : vector<1x128xf32> to vector<128x128xf32>
      %c0_10 = arith.constant 0 : index
      %c0_11 = arith.constant 0 : index
      %13 = vector.load %arg6[%c0_10, %c0_11] : memref<128x128xf32, #tpu.memory_space<vmem>>, vector<128x128xf32>
      tpu.vector_store %arg6[%c0_10, %c0_11], %12 {strides = array<i32>} : memref<128x128xf32, #tpu.memory_space<vmem>>, vector<128x128xf32>,
    } else {
    }
    %c0 = arith.constant 0 : index
    %c0_1 = arith.constant 0 : index
    %3 = vector.load %arg6[%c0, %c0_1] : memref<128x128xf32, #tpu.memory_space<vmem>>, vector<128x128xf32>
    %c0_2 = arith.constant 0 : index
    %c0_3 = arith.constant 0 : index
    %4 = vector.load %arg3[%c0_2, %c0_3] : memref<128x128xf32, #tpu.memory_space<vmem>>, vector<128x128xf32>
    %5 = arith.truncf %4 : vector<128x128xf32> to vector<128x128xbf16>
    %c0_4 = arith.constant 0 : index
    %c0_5 = arith.constant 0 : index
    %6 = vector.load %arg4[%c0_4, %c0_5] : memref<128x128xbf16, #tpu.memory_space<vmem>>, vector<128x128xbf16>
    %cst = arith.constant dense<0.000000e+00> : vector<128x128xf32>
    %7 = tpu.matmul %5, %6, %cst {dimension_numbers = #tpu.dot_dimension_numbers<[1], [0], [0], [1], [0, 0, 1, 1], [], []>} : vector<128x128xbf16>, vector<128x128xbf16>, vector<128x128xf32> -> vector<128x128xf32>
    %8 = arith.addf %3, %7 : vector<128x128xf32>
    %c0_6 = arith.constant 0 : index
    %c0_7 = arith.constant 0 : index
    %9 = vector.load %arg6[%c0_6, %c0_7] : memref<128x128xf32, #tpu.memory_space<vmem>>, vector<128x128xf32>
    tpu.vector_store %arg6[%c0_6, %c0_7], %8 {strides = array<i32>} : memref<128x128xf32, #tpu.memory_space<vmem>>, vector<128x128xf32>,
    return
  }
  func.func @transform_0(%arg0: i32, %arg1: i32, %arg2: i32) -> (i32, i32) {
    %c0_i32 = arith.constant 0 : i32
    return %arg0, %arg2 : i32, i32
  }
  func.func @transform_1(%arg0: i32, %arg1: i32, %arg2: i32) -> (i32, i32) {
    %c0_i32 = arith.constant 0 : i32
    return %arg2, %arg1 : i32, i32
  }
  func.func @transform_2(%arg0: i32, %arg1: i32, %arg2: i32) -> (i32, i32) {
    %c0_i32 = arith.constant 0 : i32
    %c0_i32_0 = arith.constant 0 : i32
    return %c0_i32, %arg1 : i32, i32
  }
  func.func @transform_3(%arg0: i32, %arg1: i32, %arg2: i32) -> (i32, i32) {
    %c0_i32 = arith.constant 0 : i32
    return %arg0, %arg1 : i32, i32
  }
}

</mosaic_0001>

<bundles_post_ra>
// kernel: tpu_custom_call.1
= control target key start
LH: loop header
LB: loop body
LE: loop exit
PB: predicated region body
PF: predicated region fallthrough
CT: control target
= control target key end

     0   :  { %s1611_s0 = inlined_call_operand.hbm [shape: f32[256,512], index: 0, kind: input, shape index: {}]   ;;  %s1612_s1 = inlined_call_operand.hbm [shape: bf16[512,256], index: 1, kind: input, shape index: {}]   ;;  %s1613_s2 = inlined_call_operand.vmem [shape: f32[1,256], index: 2, kind: input, shape index: {}]   ;;  %s1614_s3 = inlined_call_operand.hbm [shape: f32[256,256], index: 3, kind: output, shape index: {}]  }
   0x1   :  { %1628 = sst [smem:[#allocation21_spill]] %s1611_s0 }
   0x2   :  { %1629 = sst [smem:[#allocation22_spill]] %s1612_s1 }
   0x3   :  { %1630 = sst [smem:[#allocation23_spill]] %s1613_s2 }
   0x4   :  { %1631 = sst [smem:[#allocation24_spill]] %s1614_s3 }
   0x5   :  { %8 = vsyncpa [#allocation3], 0 }
   0x6   :  { %10 = vsyncpa [#allocation3 + $0x1], 0 }
   0x7   :  { %11 = vsyncpa [#allocation6], 0 }
   0x8   :  { %13 = vsyncpa [#allocation6 + $0x1], 0 }
   0x9   :  { %14 = vsyncpa [#allocation4], 0 }
   0xa   :  { %16 = vsyncpa [#allocation4 + $0x1], 0  ;;  %s1195_s12 = smov 0   ;;  %s1197_s13 = smov 0  }
   0xb   :  { %s1199_s14 = smov 0   ;;  %s1201_s15 = smov 0  }
   0xc   :  { %s1203_s16 = smov 0   ;;  %s1205_s17 = smov 0  }
   0xd   :  { %s1207_s18 = smov 0   ;;  %s1209_s19 = smov 0  }
   0xe   :  { %s1211_s20 = smov 0   ;;  %s1213_s21 = smov 0  }
   0xf   :  { %s1215_s22 = smov 0   ;;  %s1217_s23 = smov 0  }
  0x10   :  { %s1219_s24 = smov 0   ;;  %s1221_s25 = smov 0  }
  0x11   :  { %s1223_s26 = smov 0   ;;  %s1225_s27 = smov 0  }
  0x12 LB: > { %1632 = sst [smem:[#allocation11_spill]] %s1130_s19  ;;  %s680_s28 = sadd.s32 4294967295, %s1162_s27   ;;  %s1162_s27 = sphi %s1225_s27, %s22_s27   ;;  %s1158_s26 = sphi %s1223_s26, %s1688_s26   ;;  %s1154_s25 = sphi %s1221_s25, %s1675_s25   ;;  %s1150_s24 = sphi %s1219_s24, %s1687_s24   ;;  %s1146_s23 = sphi %s1217_s23, %s1673_s23   ;;  %s1142_s22 = sphi %s1215_s22, %s1672_s22   ;;  %s1138_s21 = sphi %s1213_s21, %s1686_s21   ;;  %s1134_s20 = sphi %s1211_s20, %s1685_s20   ;;  %s1130_s19 = sphi %s1209_s19, %s1684_s19   ;;  %s1126_s18 = sphi %s1207_s18, %s1671_s18   ;;  %s1122_s17 = sphi %s1205_s17, %s1683_s17   ;;  %s1118_s16 = sphi %s1203_s16, %s1682_s16   ;;  %s1114_s15 = sphi %s1201_s15, %s1681_s15   ;;  %s1110_s14 = sphi %s1199_s14, %s1680_s14   ;;  %s1106_s13 = sphi %s1197_s13, %s1679_s13   ;;  %s1102_s12 = sphi %s1195_s12, %s1677_s12  }
  0x13   : > { %1633 = sst [smem:[#allocation12_spill]] %s1138_s21  ;;  %s34_s29 = sadd.s32 1, %s1150_s24 }
  0x14   : > { %1634 = sst [smem:[#allocation13_spill]] %s1142_s22  ;;  %p1275_p0 = scmp.ge.s32.totalorder %s34_s29, 4 }
  0x15   : > { %1635 = sst [smem:[#allocation14_spill]] %s1146_s23  ;;  %p57_p1 = scmp.ne.s32.totalorder %s1134_s20, %s1130_s19 }
  0x16   : > { %1636 = sst [smem:[#allocation15_spill]] %s1154_s25  ;;  %s1690_s29 = smov (%p1275_p0, %s34_s29), 0 }
  0x17   : > { %1637 = sst [smem:[#allocation16_spill]] %s1158_s26  ;;  %p1621_p2 = scmp.eq.s32.totalorder %s1162_s27, 0 }
  0x18   : > { %1639 = sst [smem:[#allocation17_spill]] %s1690_s29  ;;  %p63_p3 = scmp.ne.s32.totalorder %s1130_s19, %s1126_s18 }
  0x19   : > { %s1291_s6 = ssub.s32 %s1150_s24, %s1690_s29  ;;  %p1293_p4 = scmp.eq.s32.totalorder %s680_s28, 0 }
  0x1a   : > { %p1299_p5 = por %p1621_p2, %p57_p1  ;;  %p1303_p6 = scmp.eq.s32.totalorder %s680_s28, 15 }
  0x1b   : > { %p1309_p7 = por %p1293_p4, %p63_p3  ;;  %p796_p8 = scmp.lt.s32.totalorder %s1162_s27, 16 }
  0x1c   : > { %s169_s11 = sand.u32 1, %s1134_s20   ;;  %s712_s5 = sshll.u32 %s1158_s26, 6 }
  0x1d   : > { %s1643_s10 = scalar_select %p1309_p7, 1, 0 }
  0x1e   : > { %s684_s18 = sshll.u32 %s169_s11, 7  ;;  %s179_s4 = sadd.s32 %s1150_s24, %s712_s5 }
  0x1f   : > { %1644 = sst [smem:[#allocation18_spill]] %s1643_s10  ;;  %s173_s29 = scalar_lea.vmem [#allocation2], %s684_s18 }
  0x20   : > { %s182_s3 = sshll.u32 %s173_s29, 4  ;;  %s687_s23 = sshll.u32 %s179_s4, 7  ;;  %s183_s3 = int_to_ptr.vmem [resolvable:$true] %s182_s3 }
  0x21   : > { %s1645_s0 = sld [smem:[#allocation21_spill]]  ;;  %p1324_p9 = pnand %p796_p8, %p1299_p5 }
  0x22   : > { %s170_s10 = scalar_lea.sflag [#allocation3], %s169_s11  ;;  %s955_s19 = scalar_lea.vmem %s183_s3, 2048 }
  0x23   : > { %p944_p10 = pneg %p1324_p9  ;;  %p956_p11 = scmp.ne.s32.totalorder %s183_s3, %s955_s19 }
  0x24   : > { %s1164_s29 = smov [#allocation2]  }
  0x25   : > { %p958_p12 = pnand %p956_p11, %p944_p10  ;;  %s960_s4 = sshll.u32 %s1164_s29, 4  ;;  %s961_s4 = int_to_ptr.vmem [resolvable:$false] %s960_s4 }
  0x26   : > { %s962_s5 = scalar_lea.vmem %s961_s4, 4096  ;;  %p963_p1 = scmp.lt.s32.totalorder %s183_s3, %s961_s4 }
  0x27   : > { %s181_s28 = scalar_lea.hbm %s1645_s0, %s687_s23  ;;  %p959_p13 = pneg %p958_p12 }
  0x28   : > { %p964_p3 = scmp.lt.s32.totalorder %s962_s5, %s955_s19 }
  0x2a   : > { %p965_p2 = por %p964_p3, %p963_p1 }
  0x2c   : > { %p966_p7 = pnand %p965_p2, %p959_p13 }
  0x2e   : > { %969 = shalt.err (!%p966_p7)
}
  0x2f   : > { %s1165_s2 = smov 512   ;;  %s1623_s19 = smov 128  }
  0x30   : > { %s1167_s21 = smov 8   ;;  %p692_p2 = scmp.ge.s32.totalorder %s1162_s27, 1 }
  0x31   : > { %788 = dma.hbm_to_vmem [thread:$0]  (!%p1324_p9), %s181_s28, 2048, %s183_s3, %s170_s10, %s1165_s2, %s1623_s19, %s1167_s21  }
  0x32   : > { %p219_p5 = scmp.lt.s32.totalorder %s1162_s27, 17  ;;  %s681_s8 = sadd.s32 4294967294, %s1162_s27  }
  0x33   : > { %s37_s11 = sadd.s32 1, %s1154_s25  ;;  %s78_s18 = sadd.s32 1, %s1122_s17 }
  0x34   : > { %p1335_p7 = pnand %p692_p2, %p219_p5  ;;  %s1692_s11 = smov (!%p1275_p0, %s37_s11), %s1154_s25 }
  0x35   : > { %p85_p10 = scmp.ne.s32.totalorder %s1122_s17, %s1118_s16  ;;  %p91_p9 = scmp.ne.s32.totalorder %s1118_s16, %s1114_s15 }
  0x36   : > { %p39_p11 = scmp.ge.s32.totalorder %s1692_s11, 2  ;;  %s132_s3 = sadd.s32 1, %s1110_s14 }
  0x37   : > { %p1648_p12 = scmp.eq.s32.totalorder %s1162_s27, 0  ;;  %p1358_p1 = por %p91_p9, %p1293_p4 }
  0x38   : > { %s1694_s11 = smov (%p39_p11, %s1692_s11), 0  ;;  %s1652_s30 = sadd.s32 1, %s1158_s26 }
  0x39   : > { %p1352_p13 = por %p85_p10, %p1648_p12  ;;  %1651 = sst [smem:[#allocation19_spill]] %s1694_s11 }
  0x3a   : > { %s1696_s30 = smov (!%p39_p11, %s1652_s30), %s1158_s26  ;;  %s74_s15 = ssub.s32 %s1154_s25, %s1694_s11 }
  0x3b   : > { %p142_p0 = scmp.ne.s32.totalorder %s1110_s14, %s1106_s13  ;;  %p43_p3 = scmp.ge.s32.totalorder %s1696_s30, 2 }
  0x3c   : > { %s75_s28 = sor.u32 %s74_s15, %s1291_s6  ;;  %p148_p5 = scmp.ne.s32.totalorder %s1106_s13, %s1102_s12 }
  0x3d   : > { %p76_p2 = scmp.eq.s32.totalorder %s75_s28, 0  ;;  %p1374_p4 = por %p1303_p6, %p142_p0 }
  0x3e   : > { %s1698_s30 = smov (%p43_p3, %s1696_s30), 0  ;;  %p149_p11 = scmp.eq.s32.totalorder %s681_s8, 15 }
  0x3f   : > { %1654 = sst [smem:[#allocation20_spill]] %s1698_s30  ;;  %s45_s4 = ssub.s32 %s1158_s26, %s1698_s30 }
  0x40   : > { %s1381_s29 = scalar_select %p76_p2, %s1122_s17, %s78_s18  }
  0x41   : > { %s47_s5 = sor.u32 %s1291_s6, %s45_s4  ;;  %s129_s2 = sor.u32 %s74_s15, %s45_s4 }
  0x42   : > { %p48_p10 = scmp.eq.s32.totalorder %s47_s5, 0  ;;  %p130_p9 = scmp.eq.s32.totalorder %s129_s2, 0 }
  0x43   : > { %s192_s9 = sand.u32 1, %s1122_s17   ;;  %s1655_s21 = sadd.s32 1, %s1134_s20 }
  0x44   : > { %s1392_s28 = scalar_select %p48_p10, %s1134_s20, %s1655_s21  }
  0x45   : > { %s1395_s19 = scalar_select %p130_p9, %s1110_s14, %s132_s3  }
  0x46   : > { %p1397_p6 = por %p149_p11, %p148_p5  ;;  %s688_s18 = sshll.u32 %s192_s9, 6 }
  0x47   : > { %s713_s30 = sshll.u32 %s1150_s24, 5  ;;  %s196_s15 = scalar_lea.vmem [#allocation5], %s688_s18 }
  0x48   : > { %s1656_s0 = scalar_select %p1397_p6, 1, 0 }
  0x49   : > { %s202_s11 = sadd.s32 %s1154_s25, %s713_s30  ;;  %s205_s4 = sshll.u32 %s196_s15, 4  ;;  %s206_s4 = int_to_ptr.vmem [resolvable:$true] %s205_s4 }
  0x4a   : > { %s691_s6 = sshll.u32 %s202_s11, 6  ;;  %s1657_s1 = sld [smem:[#allocation22_spill]] }
  0x4b   : > { %p1410_p12 = pnand %p796_p8, %p1352_p13  ;;  %s193_s2 = scalar_lea.sflag [#allocation6], %s192_s9 }
  0x4c   : > { %s983_s21 = scalar_lea.vmem %s206_s4, 1024  ;;  %s1168_s11 = smov [#allocation5]  }
  0x4d   : > { %p972_p0 = pneg %p1410_p12  ;;  %p984_p3 = scmp.ne.s32.totalorder %s206_s4, %s983_s21 }
  0x4e   : > { %s988_s30 = sshll.u32 %s1168_s11, 4  ;;  %s989_s30 = int_to_ptr.vmem [resolvable:$false] %s988_s30 }
  0x4f   : > { %p986_p2 = pnand %p984_p3, %p972_p0  ;;  %s990_s26 = scalar_lea.vmem %s989_s30, 2048 }
  0x50   : > { %s204_s8 = scalar_lea.hbm %s1657_s1, %s691_s6  ;;  %p991_p10 = scmp.lt.s32.totalorder %s206_s4, %s989_s30 }
  0x51   : > { %p987_p5 = pneg %p986_p2  ;;  %p992_p9 = scmp.lt.s32.totalorder %s990_s26, %s983_s21 }
  0x53   : > { %p993_p11 = por %p992_p9, %p991_p10 }
  0x55   : > { %p994_p6 = pnand %p993_p11, %p987_p5 }
  0x57   : > { %997 = shalt.err (!%p994_p6)
}
  0x58   : > { %s1169_s22 = smov 64   ;;  %s1170_s18 = smov 4  }
  0x59   : > { %s1659_s9 = smov 128   ;;  %223 = sbr.rel (%p1335_p7) target bundleno = 387 (0x183), region = 32 }
  0x5a   : > { %791 = dma.hbm_to_vmem [thread:$0]  (!%p1410_p12), %s204_s8, 1024, %s206_s4, %s193_s2, %s1659_s9, %s1169_s22, %s1170_s18  }
  0x5b   : > { %s1660_s6 = sld [smem:[#allocation11_spill]] (!%p1335_p7) }
  0x5c   : > { %s1661_s15 = sld [smem:[#allocation18_spill]] (!%p1335_p7) }
  0x61   : > { %s225_s5 = sand.u32 1, %s1660_s6  }
  0x62   : > { %s693_s11 = sshll.u32 %s225_s5, 7  ;;  %s226_s1 = scalar_lea.sflag [#allocation3], %s225_s5 }
  0x63   : > { %s1422_s25 = scalar_lea.vmem [#allocation2], %s693_s11  ;;  %p1662_p8 = scmp.ne.s32.totalorder %s1661_s15, 0 }
  0x65   : > { %1089 = dma.done.wait (%p1662_p8), %s226_s1, 2048  }
  0x66   : > { %1091 = vsyncadd (%p1662_p8), %s226_s1, 4294965248  ;;  %s234_s3 = sand.u32 1, %s1118_s16  }
  0x67   : > { %s694_s21 = sshll.u32 %s234_s3, 6  ;;  %s235_s4 = scalar_lea.sflag [#allocation6], %s234_s3 }
  0x68   : > { %s1429_s8 = scalar_lea.vmem [#allocation5], %s694_s21 }
  0x69   : > { %1093 = dma.done.wait (%p1358_p1), %s235_s4, 1024  }
  0x6a   : > { %1095 = vsyncadd (%p1358_p1), %s235_s4, 4294966272  ;;  %s1663_s23 = sld [smem:[#allocation13_spill]]  ;;  %s266_s2 = sand.u32 1, %s1106_s13  }
  0x6b   : > { %s695_s1 = sshll.u32 %s266_s2, 7  ;;  %s1664_s22 = sld [smem:[#allocation23_spill]] }
  0x6c   : > { %s1443_s9 = scalar_lea.vmem [#allocation7], %s695_s1  ;;  %s1665_s6 = sld [smem:[#allocation12_spill]] }
  0x70   : > { %p271_p7 = scmp.lt.s32.totalorder %s1663_s23, 1 }
  0x72   : > { %s1700_s23 = smov (!%p271_p7, %s1663_s23), 1  ;;  %p696_p13 = scmp.ne.s32.totalorder %s1665_s6, 0 }
  0x73   : > { %s273_s18 = scalar_lea.vmem %s1664_s22, %s1700_s23 }
  0x74   : > { %279 = sbr.rel (%p696_p13) target bundleno = 130 (0x82), region = 44 }
  0x79   : > { %v697_v0 = vld [vmem:[%s273_s18] ss:$0 sm:$0xff] }
  0x7a   : > { %287 = vst [vmem:[%s1443_s9] sm:$0xff] %v697_v0  ;;  %288 = vst [vmem:[%s1443_s9 + $0x8] sm:$0xff] %v697_v0 }
  0x7b   : > { %289 = vst [vmem:[%s1443_s9 + $0x10] sm:$0xff] %v697_v0  ;;  %290 = vst [vmem:[%s1443_s9 + $0x18] sm:$0xff] %v697_v0 }
  0x7c   : > { %291 = vst [vmem:[%s1443_s9 + $0x20] sm:$0xff] %v697_v0  ;;  %292 = vst [vmem:[%s1443_s9 + $0x28] sm:$0xff] %v697_v0 }
  0x7d   : > { %293 = vst [vmem:[%s1443_s9 + $0x30] sm:$0xff] %v697_v0  ;;  %294 = vst [vmem:[%s1443_s9 + $0x38] sm:$0xff] %v697_v0 }
  0x7e   : > { %295 = vst [vmem:[%s1443_s9 + $0x40] sm:$0xff] %v697_v0  ;;  %296 = vst [vmem:[%s1443_s9 + $0x48] sm:$0xff] %v697_v0 }
  0x7f   : > { %297 = vst [vmem:[%s1443_s9 + $0x50] sm:$0xff] %v697_v0  ;;  %298 = vst [vmem:[%s1443_s9 + $0x58] sm:$0xff] %v697_v0 }
  0x80   : > { %299 = vst [vmem:[%s1443_s9 + $0x60] sm:$0xff] %v697_v0  ;;  %300 = vst [vmem:[%s1443_s9 + $0x68] sm:$0xff] %v697_v0 }
  0x81   : > { %301 = vst [vmem:[%s1443_s9 + $0x70] sm:$0xff] %v697_v0  ;;  %302 = vst [vmem:[%s1443_s9 + $0x78] sm:$0xff] %v697_v0 }
  0x82 PF: > { %v934_v1 = vld [vmem:[%s1429_s8 + $0x38] sm:$0xff]   ;;  %v935_v2 = vld [vmem:[%s1429_s8 + $0x30] sm:$0xff]   ;;  %v936_v3 = vld [vmem:[%s1429_s8 + $0x28] sm:$0xff]   ;;  %s1666_s10 = sld [smem:[#allocation14_spill]]  ;;  %s552_s3 = sshll.u32 %s1443_s9, 4  ;;  %s1522_s3 = int_to_ptr.vmem [resolvable:$true] %s552_s3 }
  0x83   : > { %731 = vmatprep.subr.bf16.mxu0 %v934_v1  ;;  %763 = vmatprep.subr.bf16.mxu1 %v934_v1  ;;  %v937_v4 = vld [vmem:[%s1429_s8 + $0x20] sm:$0xff]   ;;  %v320_v6 = vld [vmem:[%s1422_s25 + $0x8] sm:$0xff]  ;;  %v938_v11 = vld [vmem:[%s1429_s8 + $0x18] sm:$0xff]   ;;  %s1530_s1 = scalar_lea.sflag [#allocation4], %s266_s2  ;;  %s998_s30 = scalar_lea.vmem %s1522_s3, 2048 }
  0x84   : > { %732 = vmatpush3.bf16.msra.mxu0 %v934_v1  ;;  %771 = vmatpush3.bf16.msra.mxu1 %v934_v1  ;;  %v319_v5 = vld [vmem:[%s1422_s25] sm:$0xff]  ;;  %v328_v9 = vld [vmem:[%s1422_s25 + $0x48] sm:$0xff]  ;;  %v939_v12 = vld [vmem:[%s1429_s8 + $0x10] sm:$0xff]   ;;  %p999_p1 = scmp.ne.s32.totalorder %s1522_s3, %s998_s30  ;;  %s1171_s26 = smov [#allocation7]  }
  0x85   : > { %733 = vmatprep.subr.bf16.mxu0 %v935_v2  ;;  %764 = vmatprep.subr.bf16.mxu1 %v935_v2  ;;  %v327_v7 = vld [vmem:[%s1422_s25 + $0x40] sm:$0xff]  ;;  %v335_v8 = vpack.c.bf16 %v320_v6, %v319_v5  ;;  %v940_v13 = vld [vmem:[%s1429_s8 + $0x8] sm:$0xff]   ;;  %v321_v15 = vld [vmem:[%s1422_s25 + $0x10] sm:$0xff]  ;;  %s1002_s22 = sshll.u32 %s1171_s26, 4  ;;  %s1003_s22 = int_to_ptr.vmem [resolvable:$false] %s1002_s22 }
  0x86   : > { %v339_v10 = vpack.c.bf16 %v328_v9, %v327_v7  ;;  %v941_v14 = vld [vmem:[%s1429_s8] sm:$0xff]   ;;  %v322_v16 = vld [vmem:[%s1422_s25 + $0x18] sm:$0xff]  ;;  %v329_v17 = vld [vmem:[%s1422_s25 + $0x50] sm:$0xff]  ;;  %s1668_s8 = sld [smem:[#allocation24_spill]]  ;;  %p1000_p6 = pnand %p999_p1, %p1374_p4 }
  0x87   : > { %747 = vmatprep.mubr.bf16.mxu0 %v335_v8  ;;  %v330_v18 = vld [vmem:[%s1422_s25 + $0x58] sm:$0xff]  ;;  %v323_v19 = vld [vmem:[%s1422_s25 + $0x20] sm:$0xff]  ;;  %v324_v20 = vld [vmem:[%s1422_s25 + $0x28] sm:$0xff]  ;;  %v336_v23 = vpack.c.bf16 %v322_v16, %v321_v15  ;;  %s1004_s18 = scalar_lea.vmem %s1003_s22, 4096  ;;  %p1005_p0 = scmp.lt.s32.totalorder %s1522_s3, %s1003_s22 }
  0x88   : > { %734 = vmatpush3.bf16.msra.mxu0 %v935_v2  ;;  %772 = vmatpush3.bf16.msra.mxu1 %v935_v2  ;;  %v331_v21 = vld [vmem:[%s1422_s25 + $0x60] sm:$0xff]  ;;  %v332_v22 = vld [vmem:[%s1422_s25 + $0x68] sm:$0xff]  ;;  %v340_v24 = vpack.c.bf16 %v330_v18, %v329_v17  ;;  %v337_v25 = vpack.c.bf16 %v324_v20, %v323_v19  ;;  %v325_v27 = vld [vmem:[%s1422_s25 + $0x30] sm:$0xff]  ;;  %s714_s15 = sshll.u32 %s1666_s10, 5  ;;  %p1001_p12 = pneg %p1000_p6 }
  0x89   : > { %735 = vmatprep.subr.bf16.mxu0 %v936_v3  ;;  %765 = vmatprep.subr.bf16.mxu1 %v936_v3  ;;  %v341_v26 = vpack.c.bf16 %v332_v22, %v331_v21  ;;  %v326_v28 = vld [vmem:[%s1422_s25 + $0x38] sm:$0xff]  ;;  %v333_v29 = vld [vmem:[%s1422_s25 + $0x70] sm:$0xff]  ;;  %v303_v37 = vld [vmem:[%s1443_s9] sm:$0xff]  ;;  %p1006_p3 = scmp.lt.s32.totalorder %s1004_s18, %s998_s30 }
  0x8a   : > { %755 = vmatprep.mubr.bf16.mxu1 %v339_v10  ;;  %v334_v30 = vld [vmem:[%s1422_s25 + $0x78] sm:$0xff]  ;;  %v338_v31 = vpack.c.bf16 %v326_v28, %v325_v27  ;;  %v305_v33 = vld [vmem:[%s1443_s9 + $0x10] sm:$0xff]  ;;  %v311_v38 = vld [vmem:[%s1443_s9 + $0x40] sm:$0xff]  ;;  %s1667_s25 = sld [smem:[#allocation13_spill]] }
  0x8b   : > { %v342_v32 = vpack.c.bf16 %v334_v30, %v333_v29  ;;  %v313_v34 = vld [vmem:[%s1443_s9 + $0x50] sm:$0xff]  ;;  %v306_v43 = vld [vmem:[%s1443_s9 + $0x18] sm:$0xff]  ;;  %v304_v49 = vld [vmem:[%s1443_s9 + $0x8] sm:$0xff]  ;;  %p1007_p2 = por %p1006_p3, %p1005_p0 }
  0x8c   : > { %736 = vmatpush3.bf16.msra.mxu0 %v936_v3  ;;  %773 = vmatpush3.bf16.msra.mxu1 %v936_v3  ;;  %v314_v44 = vld [vmem:[%s1443_s9 + $0x58] sm:$0xff]  ;;  %v312_v50 = vld [vmem:[%s1443_s9 + $0x48] sm:$0xff]  ;;  %v309_v55 = vld [vmem:[%s1443_s9 + $0x30] sm:$0xff] }
  0x8d   : > { %737 = vmatprep.subr.bf16.mxu0 %v937_v4  ;;  %766 = vmatprep.subr.bf16.mxu1 %v937_v4  ;;  %v317_v56 = vld [vmem:[%s1443_s9 + $0x70] sm:$0xff]  ;;  %v307_v61 = vld [vmem:[%s1443_s9 + $0x20] sm:$0xff]  ;;  %v310_v3 = vld [vmem:[%s1443_s9 + $0x38] sm:$0xff]  ;;  %p1008_p5 = pnand %p1007_p2, %p1001_p12 }
  0x8e   : > { %v315_v62 = vld [vmem:[%s1443_s9 + $0x60] sm:$0xff]  ;;  %v308_v9 = vld [vmem:[%s1443_s9 + $0x28] sm:$0xff] }
  0x8f   : > { %v316_v10 = vld [vmem:[%s1443_s9 + $0x68] sm:$0xff] }
  0x90   : > { %738 = vmatpush3.bf16.msra.mxu0 %v937_v4  ;;  %774 = vmatpush3.bf16.msra.mxu1 %v937_v4  ;;  %s549_s5 = sadd.s32 %s1667_s25, %s714_s15  ;;  %v318_v4 = vld [vmem:[%s1443_s9 + $0x78] sm:$0xff] }
  0x91   : > { %739 = vmatprep.subr.bf16.mxu0 %v938_v11  ;;  %767 = vmatprep.subr.bf16.mxu1 %v938_v11  ;;  %s709_s11 = sshll.u32 %s549_s5, 7 }
  0x92   : > { %s1520_s23 = scalar_lea.hbm %s1668_s8, %s709_s11 }
  0x94   : > { %740 = vmatpush3.bf16.msra.mxu0 %v938_v11  ;;  %775 = vmatpush3.bf16.msra.mxu1 %v938_v11 }
  0x95   : > { %741 = vmatprep.subr.bf16.mxu0 %v939_v12  ;;  %768 = vmatprep.subr.bf16.mxu1 %v939_v12 }
  0x98   : > { %742 = vmatpush3.bf16.msra.mxu0 %v939_v12  ;;  %776 = vmatpush3.bf16.msra.mxu1 %v939_v12 }
  0x99   : > { %743 = vmatprep.subr.bf16.mxu0 %v940_v13  ;;  %769 = vmatprep.subr.bf16.mxu1 %v940_v13 }
  0x9c   : > { %744 = vmatpush3.bf16.msra.mxu0 %v940_v13  ;;  %777 = vmatpush3.bf16.msra.mxu1 %v940_v13 }
  0x9d   : > { %745 = vmatprep.subr.bf16.mxu0 %v941_v14  ;;  %770 = vmatprep.subr.bf16.mxu1 %v941_v14 }
  0xa0   : > { %746 = vmatpush3.bf16.msra.mxu0 %v941_v14  ;;  %778 = vmatpush3.bf16.msra.mxu1 %v941_v14 }
  0xa3   : > { %748 = vmatmul.mubr.bf16.vlgmr.msra.gmra.mxu0 %v336_v23  ;;  %756 = vmatmul.mubr.bf16.vlgmr.msra.gmra.mxu1 %v340_v24 }
  0xa4   : > { %751 = vmatprep.mubr.bf16.mxu0 %v337_v25  ;;  %759 = vmatprep.mubr.bf16.mxu1 %v341_v26 }
  0xab   : > { %752 = vmatmul.mubr.bf16.gmra.mxu0 %v338_v31  ;;  %760 = vmatmul.mubr.bf16.gmra.mxu1 %v342_v32 }
 0x163   : > { %v749_v35 = vpop.f32.mrf.mxu0  ;;  %v757_v36 = vpop.f32.mrf.mxu1 }
 0x164   : > { %v506_v39 = vadd.f32 %v749_v35, %v305_v33  ;;  %v514_v40 = vadd.f32 %v757_v36, %v313_v34 }
 0x165   : > { %v441_v41 = vpop.f32.mrf.mxu0  ;;  %v473_v42 = vpop.f32.mrf.mxu1 }
 0x166   : > { %522 = vst [vmem:[%s1443_s9 + $0x10] sm:$0xff] %v506_v39  ;;  %530 = vst [vmem:[%s1443_s9 + $0x50] sm:$0xff] %v514_v40  ;;  %v504_v45 = vadd.f32 %v441_v41, %v303_v37  ;;  %v512_v46 = vadd.f32 %v473_v42, %v311_v38 }
 0x167   : > { %v750_v47 = vpop.f32.mrf.mxu0  ;;  %v758_v48 = vpop.f32.mrf.mxu1 }
 0x168   : > { %520 = vst [vmem:[%s1443_s9] sm:$0xff] %v504_v45  ;;  %528 = vst [vmem:[%s1443_s9 + $0x40] sm:$0xff] %v512_v46  ;;  %v507_v51 = vadd.f32 %v750_v47, %v306_v43  ;;  %v515_v52 = vadd.f32 %v758_v48, %v314_v44 }
 0x169   : > { %v444_v53 = vpop.f32.mrf.mxu0  ;;  %v476_v54 = vpop.f32.mrf.mxu1 }
 0x16a   : > { %523 = vst [vmem:[%s1443_s9 + $0x18] sm:$0xff] %v507_v51  ;;  %531 = vst [vmem:[%s1443_s9 + $0x58] sm:$0xff] %v515_v52  ;;  %v505_v57 = vadd.f32 %v444_v53, %v304_v49  ;;  %v513_v58 = vadd.f32 %v476_v54, %v312_v50 }
 0x16b   : > { %v753_v59 = vpop.f32.mrf.mxu0  ;;  %v761_v60 = vpop.f32.mrf.mxu1 }
 0x16c   : > { %521 = vst [vmem:[%s1443_s9 + $0x8] sm:$0xff] %v505_v57  ;;  %529 = vst [vmem:[%s1443_s9 + $0x48] sm:$0xff] %v513_v58  ;;  %v510_v63 = vadd.f32 %v753_v59, %v309_v55  ;;  %v518_v0 = vadd.f32 %v761_v60, %v317_v56 }
 0x16d   : > { %v457_v1 = vpop.f32.mrf.mxu0  ;;  %v489_v2 = vpop.f32.mrf.mxu1 }
 0x16e   : > { %526 = vst [vmem:[%s1443_s9 + $0x30] sm:$0xff] %v510_v63  ;;  %534 = vst [vmem:[%s1443_s9 + $0x70] sm:$0xff] %v518_v0  ;;  %v508_v5 = vadd.f32 %v457_v1, %v307_v61  ;;  %v516_v6 = vadd.f32 %v489_v2, %v315_v62 }
 0x16f   : > { %v754_v7 = vpop.f32.mrf.mxu0  ;;  %v762_v8 = vpop.f32.mrf.mxu1 }
 0x170   : > { %524 = vst [vmem:[%s1443_s9 + $0x20] sm:$0xff] %v508_v5  ;;  %532 = vst [vmem:[%s1443_s9 + $0x60] sm:$0xff] %v516_v6  ;;  %v511_v11 = vadd.f32 %v754_v7, %v310_v3  ;;  %v519_v12 = vadd.f32 %v762_v8, %v318_v4 }
 0x171   : > { %v460_v13 = vpop.f32.mrf.mxu0  ;;  %v492_v14 = vpop.f32.mrf.mxu1 }
 0x172   : > { %527 = vst [vmem:[%s1443_s9 + $0x38] sm:$0xff] %v511_v11  ;;  %535 = vst [vmem:[%s1443_s9 + $0x78] sm:$0xff] %v519_v12  ;;  %v509_v15 = vadd.f32 %v460_v13, %v308_v9  ;;  %v517_v16 = vadd.f32 %v492_v14, %v316_v10 }
 0x174   : > { %525 = vst [vmem:[%s1443_s9 + $0x28] sm:$0xff] %v509_v15  ;;  %533 = vst [vmem:[%s1443_s9 + $0x68] sm:$0xff] %v517_v16 }
 0x175   : > { %1011 = shalt.err (!%p1008_p5)
}
 0x176   : > { %s1012_s2 = scalar_lea.hbm %s1520_s23, 2048  ;;  %s1016_s10 = scalar_lea.hbm %s1668_s8, 8192 }
 0x177   : > { %p1013_p10 = scmp.ne.s32.totalorder %s1520_s23, %s1012_s2  ;;  %p1017_p8 = scmp.lt.s32.totalorder %s1520_s23, %s1668_s8 }
 0x178   : > { %p1018_p7 = scmp.lt.s32.totalorder %s1016_s10, %s1012_s2 }
 0x179   : > { %p1014_p9 = pnand %p1013_p10, %p1374_p4 }
 0x17a   : > { %p1019_p13 = por %p1018_p7, %p1017_p8 }
 0x17b   : > { %p1015_p11 = pneg %p1014_p9 }
 0x17d   : > { %p1020_p1 = pnand %p1019_p13, %p1015_p11 }
 0x17f   : > { %1023 = shalt.err (!%p1020_p1)
}
 0x180   : > { %s1172_s5 = smov 128   ;;  %s1173_s11 = smov 256  }
 0x181   : > { %s1174_s21 = smov 8  }
 0x182   : > { %783 = dma.vmem_to_hbm [thread:$0]  (%p1374_p4), %s1522_s3, 2048, %s1520_s23, %s1530_s1, %s1172_s5, %s1173_s11, %s1174_s21  }
 0x183 PF: > { %p797_p6 = scmp.ge.s32.totalorder %s1162_s27, 2  ;;  %s567_s4 = sand.u32 1, %s1102_s12  }
 0x184   : > { %p1669_p12 = scmp.ne.s32.totalorder %s1656_s0, 0  ;;  %s568_s30 = scalar_lea.sflag [#allocation4], %s567_s4 }
 0x186   : > { %p793_p0 = pnand %p797_p6, %p1669_p12 }
 0x188   : > { %p794_p3 = pneg %p793_p0 }
 0x18a   : > { %1097 = dma.done.wait (%p794_p3), %s568_s30, 2048  }
 0x18b   : > { %1099 = vsyncadd (%p794_p3), %s568_s30, 4294965248  ;;  %s22_s27 = sadd.s32 1, %s1162_s27   ;;  %s1671_s18 = sld [smem:[#allocation11_spill]] }
 0x18c   : > { %p1558_p2 = scmp.ge.s32.totalorder %s22_s27, 18   ;;  %s1672_s22 = sld [smem:[#allocation15_spill]] }
 0x18d   : > { %s1673_s23 = sld [smem:[#allocation16_spill]]  ;;  %s1677_s12 = smov %s1106_s13 }
 0x18e   : > { %s1674_s0 = sld [smem:[#allocation17_spill]]  ;;  %s1679_s13 = smov %s1110_s14 }
 0x18f   : > { %s1675_s25 = sld [smem:[#allocation19_spill]]  ;;  %s1680_s14 = smov %s1395_s19 }
 0x190   : > { %s1676_s7 = sld [smem:[#allocation20_spill]]  ;;  %s1681_s15 = smov %s1118_s16 }
 0x191   : > { %s1682_s16 = smov %s1122_s17  ;;  %s1683_s17 = smov %s1381_s29 }
 0x192   : > { %s1684_s19 = smov %s1134_s20  ;;  %s1685_s20 = smov %s1392_s28 }
 0x193   : > { %s1686_s21 = smov %s1150_s24  ;;  %21 = sbr.rel (!%p1558_p2) target bundleno = 18 (0x12), region = 97 }
 0x194   : > { %s1687_s24 = smov %s1674_s0 }
 0x196   : > { %s1688_s26 = smov %s1676_s7 }
 0x198   :  { %573 = vsyncpa [#allocation3], 1 }
 0x199   :  { %575 = vsyncpa [#allocation3 + $0x1], 1 }
 0x19a   :  { %576 = vsyncpa [#allocation6], 1 }
 0x19b   :  { %578 = vsyncpa [#allocation6 + $0x1], 1 }
 0x19c   :  { %579 = vsyncpa [#allocation4], 1 }
 0x19d   :  { %581 = vsyncpa [#allocation4 + $0x1], 1 }

</bundles_post_ra>
